<compile_context>
chip_gen: v6e
topology: v6e:2x2x1
jax: 0.10.0
libtpu: 0.0.40
codegen_flags: <defaults>
</compile_context>

<pallas_src>
import functools

import jax
import jax.numpy as jnp
from jax import lax
from jax.experimental import pallas as pl
from jax.experimental.pallas import tpu as pltpu


def _cdiv(a, b):
    return (a + b - 1) // b


def _round_up(a, b):
    return _cdiv(a, b) * b


# --------------------------------------------------------------------------
# Phase 1: conv tile (folded-K im2col matmul) + BN partial sums per tile.
# --------------------------------------------------------------------------
def _conv_stats_kernel(xm_ref, xn_ref, w_ref, y_ref, st_ref, *,
                       kernel_size, stride, tile_l, l_out):
    # xm_ref : (stride, C_in, TL)   current polyphase input tile
    # xn_ref : (stride, C_in, TL)   next tile (halo source, first (K-1)//s cols)
    # w_ref  : (C_out, K*C_in)      folded weights (k-major rows)
    # y_ref  : (C_out, TL)          conv output tile (L on lanes -> dense vst)
    # st_ref : (C_out, 2)           per-tile [sum, sum_of_squares]
    lt = pl.program_id(1)
    halo = (kernel_size - 1) // stride

    x = xm_ref[...]
    if halo > 0:
        x = jnp.concatenate([x, xn_ref[:, :, :halo]], axis=-1)

    # im2col: stack the K taps along the contraction axis -> a single matmul
    # contracting K*C_in instead of K matmuls contracting only C_in.
    taps = []
    for k in range(kernel_size):
        p, off = k % stride, k // stride
        taps.append(x[p, :, off:off + tile_l])              # (C_in, TL) static slice
    xcol = jnp.concatenate(taps, axis=0) if kernel_size > 1 else taps[0]

    acc = lax.dot_general(
        w_ref[...], xcol,
        dimension_numbers=(((1,), (0,)), ((), ())),
        preferred_element_type=jnp.float32)                 # (C_out, TL)

    y_ref[...] = acc.astype(y_ref.dtype)

    # Mask lanes beyond L_out (partial last tile) before the stats reduction.
    l_ids = lt * tile_l + lax.broadcasted_iota(jnp.int32, (1, tile_l), 1)
    accm = jnp.where(l_ids < l_out, acc, 0.0)
    s1 = jnp.sum(accm, axis=1, keepdims=True)               # (C_out, 1)
    s2 = jnp.sum(accm * accm, axis=1, keepdims=True)        # (C_out, 1)
    st_ref[...] = jnp.concatenate([s1, s2], axis=1)          # (C_out, 2)


# --------------------------------------------------------------------------
# Phase 2: y * scale + shift, ReLU (per-channel affine precomputed outside).
# --------------------------------------------------------------------------
def _bn_relu_kernel(y_ref, sc_ref, sh_ref, o_ref):
    o_ref[...] = jnp.maximum(
        y_ref[...] * sc_ref[...] + sh_ref[...], 0.0).astype(o_ref.dtype)


def conv_bn_relu(x_ncl, weight_oik, gamma, beta, *, pad, stride, eps=1e-5,
                 max_tile_l=512):
    """Conv1d(no bias) + BatchNorm1d(batch stats) + ReLU.

    x_ncl      : (N, C_in, L)       float32 (PyTorch NCL layout)
    weight_oik : (C_out, C_in, K)   float32 (PyTorch Conv1d weight layout)
    gamma/beta : (C_out,)           float32
    returns    : (N, C_out, L_out)  float32
    """
    n, c_in, l_in = x_ncl.shape
    c_out, _, k = weight_oik.shape
    l_pad = l_in + 2 * pad
    l_out = (l_pad - k) // stride + 1
    assert l_out > 0

    tile_l = min(max_tile_l, _round_up(l_out, 128))         # f32 lane tile
    num_lt = _cdiv(l_out, tile_l)

    # Polyphase layout (N, stride, C_in, L_ds): stride>1 becomes contiguous
    # lane slices inside the kernel.  One extra zero tile on the right keeps
    # the halo ("next tile") block in bounds; those zeros only feed lanes that
    # are masked from the stats and discarded from the output.
    l_ds = (num_lt + 1) * tile_l
    x_full = jnp.pad(
        x_ncl, ((0, 0), (0, 0), (pad, l_ds * stride - l_in - pad)))
    x_ph = x_full.reshape(n, c_in, l_ds, stride).transpose(0, 3, 1, 2)

    # Fold K into the contraction: (C_out, K*C_in), k-major rows.
    w2 = jnp.transpose(weight_oik, (0, 2, 1)).reshape(c_out, k * c_in)

    cparams = pltpu.CompilerParams(
        dimension_semantics=("parallel", "parallel"),        # v7x: 2 TCs
        vmem_limit_bytes=32 * 1024 * 1024)                   # fits v7x 64 MiB VMEM

    conv_kernel = functools.partial(
        _conv_stats_kernel, kernel_size=k, stride=stride,
        tile_l=tile_l, l_out=l_out)

    y, stats = pl.pallas_call(
        conv_kernel,
        grid=(n, num_lt),
        in_specs=[
            pl.BlockSpec((None, stride, c_in, tile_l),
                         lambda b, lt: (b, 0, 0, lt)),
            pl.BlockSpec((None, stride, c_in, tile_l),
                         lambda b, lt: (b, 0, 0, lt + 1)),
            pl.BlockSpec((c_out, k * c_in), lambda b, lt: (0, 0)),
        ],
        out_specs=(
            pl.BlockSpec((None, c_out, tile_l), lambda b, lt: (b, 0, lt)),
            pl.BlockSpec((None, None, c_out, 2), lambda b, lt: (b, lt, 0, 0)),
        ),
        out_shape=(
            jax.ShapeDtypeStruct((n, c_out, l_out), jnp.float32),
            jax.ShapeDtypeStruct((n, num_lt, c_out, 2), jnp.float32),
        ),
        compiler_params=cparams,
    )(x_ph, x_ph, w2)

    # Global BN stats from per-tile partial sums (biased variance, PyTorch
    # training-mode normalization).  Tiny (C_out, 2) reduction done in XLA.
    totals = jnp.sum(stats, axis=(0, 1))                     # (C_out, 2)
    count = jnp.float32(n * l_out)
    mean = totals[:, 0] / count
    var = totals[:, 1] / count - mean * mean
    inv = lax.rsqrt(var + eps)
    g32 = gamma.astype(jnp.float32)
    scale = (g32 * inv).reshape(c_out, 1)
    shift = (beta.astype(jnp.float32) - mean * g32 * inv).reshape(c_out, 1)

    out = pl.pallas_call(
        _bn_relu_kernel,
        grid=(n, num_lt),
        in_specs=[
            pl.BlockSpec((None, c_out, tile_l), lambda b, lt: (b, 0, lt)),
            pl.BlockSpec((c_out, 1), lambda b, lt: (0, 0)),
            pl.BlockSpec((c_out, 1), lambda b, lt: (0, 0)),
        ],
        out_specs=pl.BlockSpec((None, c_out, tile_l), lambda b, lt: (b, 0, lt)),
        out_shape=jax.ShapeDtypeStruct((n, c_out, l_out), jnp.float32),
        input_output_aliases={0: 0},                          # normalize in place
        compiler_params=cparams,
    )(y, scale, shift)

    # TODO(synk): BatchNorm1d running_mean/running_var (momentum) buffers are
    # not produced/updated; the forward output does not depend on them.
    return out


def _reference(x_ncl, weight_oik, gamma, beta, *, pad, stride, eps=1e-5):
    y = lax.conv_general_dilated(
        x_ncl, weight_oik, window_strides=(stride,), padding=[(pad, pad)],
        dimension_numbers=("NCH", "OIH", "NCH"))
    mean = jnp.mean(y, axis=(0, 2), keepdims=True)
    var = jnp.mean((y - mean) ** 2, axis=(0, 2), keepdims=True)
    yn = (y - mean) * lax.rsqrt(var + eps)
    yn = yn * gamma.reshape(1, -1, 1) + beta.reshape(1, -1, 1)
    return jnp.maximum(yn, 0.0)


if __name__ == "__main__":
    key = jax.random.PRNGKey(0)
    kx, kw, kg, kb = jax.random.split(key, 4)

    # Conv(in_ch=4, out_ch=8, kernel_size=3, pad=1, str=1), plus a stride-2
    # (down-sampling) variant to exercise the polyphase/halo path.
    configs = [
        dict(N=2, C_IN=4, L=16, C_OUT=8, K=3, PAD=1, STR=1),
        dict(N=2, C_IN=4, L=16, C_OUT=8, K=3, PAD=1, STR=2),
    ]
    for cfg in configs:
        N, C_IN, L = cfg["N"], cfg["C_IN"], cfg["L"]
        C_OUT, K, PAD, STR = cfg["C_OUT"], cfg["K"], cfg["PAD"], cfg["STR"]

        x = jax.random.normal(kx, (N, C_IN, L), dtype=jnp.float32)
        w = jax.random.normal(kw, (C_OUT, C_IN, K), dtype=jnp.float32) * 0.1
        gamma = 1.0 + 0.1 * jax.random.normal(kg, (C_OUT,), dtype=jnp.float32)
        beta = 0.1 * jax.random.normal(kb, (C_OUT,), dtype=jnp.float32)

        fn = jax.jit(functools.partial(conv_bn_relu, pad=PAD, stride=STR))
        out = jax.block_until_ready(fn(x, w, gamma, beta))

        l_out = (L + 2 * PAD - K) // STR + 1
        ref = _reference(x, w, gamma, beta, pad=PAD, stride=STR)
        assert out.shape == (N, C_OUT, l_out), out.shape
        assert jnp.allclose(out, ref, atol=1e-3, rtol=1e-3), (
            "mismatch vs reference", float(jnp.max(jnp.abs(out - ref))))

    print("KERNEL_OK")
</pallas_src>

<mosaic_0001>
module attributes {stable_mosaic.version = 11 : i64} {
  func.func @_conv_stats_kernel(%arg0: i32, %arg1: i32, %arg2: memref<1x1x4x128xf32, #tpu.memory_space<vmem>>, %arg3: memref<1x1x4x128xf32, #tpu.memory_space<vmem>>, %arg4: memref<8x12xf32, #tpu.memory_space<vmem>>, %arg5: memref<1x8x128xf32, #tpu.memory_space<vmem>>, %arg6: memref<1x1x8x2xf32, #tpu.memory_space<vmem>>) attributes {dimension_semantics = [#tpu.dimension_semantics<parallel>, #tpu.dimension_semantics<parallel>], iteration_bounds = array<i64: 2, 1>, scalar_prefetch = 0 : i64, scratch_operands = 0 : i64, tpu.core_type = #tpu.core_type<tc>, window_params = [{transform_indices = @transform_0, window_bounds = array<i64: 1, 1, 4, 128>}, {transform_indices = @transform_1, window_bounds = array<i64: 1, 1, 4, 128>}, {pipeline_mode = #tpu.pipeline_mode<synchronous>, transform_indices = @transform_2, window_bounds = array<i64: 8, 12>}, {transform_indices = @transform_3, window_bounds = array<i64: 1, 8, 128>}, {transform_indices = @transform_4, window_bounds = array<i64: 1, 1, 8, 2>}]} {
    %c0 = arith.constant 0 : index
    %c0_0 = arith.constant 0 : index
    %c0_1 = arith.constant 0 : index
    %c0_2 = arith.constant 0 : index
    %0 = vector.load %arg2[%c0, %c0_0, %c0_1, %c0_2] : memref<1x1x4x128xf32, #tpu.memory_space<vmem>>, vector<1x1x4x128xf32>
    %1 = vector.shape_cast %0 : vector<1x1x4x128xf32> to vector<1x4x128xf32>
    %c0_3 = arith.constant 0 : index
    %c0_4 = arith.constant 0 : index
    %c0_5 = arith.constant 0 : index
    %c0_6 = arith.constant 0 : index
    %2 = vector.load %arg3[%c0_3, %c0_4, %c0_5, %c0_6] : memref<1x1x4x128xf32, #tpu.memory_space<vmem>>, vector<1x1x4x2xf32>
    %3 = vector.shape_cast %2 : vector<1x1x4x2xf32> to vector<1x4x2xf32>
    %4 = tpu.concatenate %1, %3 in 2 : vector<1x4x128xf32>, vector<1x4x2xf32> -> vector<1x4x130xf32>
    %5 = vector.extract_strided_slice %4 {offsets = [0, 0, 0], sizes = [1, 4, 128], strides = [1, 1, 1]} : vector<1x4x130xf32> to vector<1x4x128xf32>
    %6 = vector.shape_cast %5 : vector<1x4x128xf32> to vector<4x128xf32>
    %7 = vector.extract_strided_slice %4 {offsets = [0, 0, 1], sizes = [1, 4, 128], strides = [1, 1, 1]} : vector<1x4x130xf32> to vector<1x4x128xf32>
    %8 = vector.shape_cast %7 : vector<1x4x128xf32> to vector<4x128xf32>
    %9 = vector.extract_strided_slice %4 {offsets = [0, 0, 2], sizes = [1, 4, 128], strides = [1, 1, 1]} : vector<1x4x130xf32> to vector<1x4x128xf32>
    %10 = vector.shape_cast %9 : vector<1x4x128xf32> to vector<4x128xf32>
    %11 = tpu.concatenate %6, %8, %10 in 0 : vector<4x128xf32>, vector<4x128xf32>, vector<4x128xf32> -> vector<12x128xf32>
    %c0_7 = arith.constant 0 : index
    %c0_8 = arith.constant 0 : index
    %12 = vector.load %arg4[%c0_7, %c0_8] : memref<8x12xf32, #tpu.memory_space<vmem>>, vector<8x12xf32>
    %cst = arith.constant dense<0.000000e+00> : vector<8x128xf32>
    %13 = tpu.matmul %12, %11, %cst {dimension_numbers = #tpu.dot_dimension_numbers<[1], [0], [0], [1], [0, 0, 1, 1], [], []>} : vector<8x12xf32>, vector<12x128xf32>, vector<8x128xf32> -> vector<8x128xf32>
    %c0_9 = arith.constant 0 : index
    %c0_10 = arith.constant 0 : index
    %c0_11 = arith.constant 0 : index
    %14 = vector.load %arg5[%c0_9, %c0_10, %c0_11] : memref<1x8x128xf32, #tpu.memory_space<vmem>>, vector<1x8x128xf32>
    %15 = vector.shape_cast %14 : vector<1x8x128xf32> to vector<8x128xf32>
    %16 = vector.shape_cast %13 : vector<8x128xf32> to vector<1x8x128xf32>
    tpu.vector_store %arg5[%c0_9, %c0_10, %c0_11], %16 {strides = array<i32>} : memref<1x8x128xf32, #tpu.memory_space<vmem>>, vector<1x8x128xf32>,
    %c128_i32 = arith.constant 128 : i32
    %17 = arith.muli %arg1, %c128_i32 : i32
    %18 = tpu.iota {dimensions = array<i32: 1>} : vector<1x128xi32>
    %19 = vector.broadcast %17 : i32 to vector<1x128xi32>
    %20 = arith.addi %19, %18 : vector<1x128xi32>
    %c16_i32 = arith.constant 16 : i32
    %21 = vector.broadcast %c16_i32 : i32 to vector<1x128xi32>
    %22 = arith.cmpi slt, %20, %21 : vector<1x128xi32>
    %cst_12 = arith.constant 0.000000e+00 : f32
    %23 = vector.shape_cast %22 : vector<1x128xi1> to vector<1x128xi1>
    %24 = vector.broadcast %23 : vector<1x128xi1> to vector<8x128xi1>
    %25 = vector.broadcast %cst_12 : f32 to vector<8x128xf32>
    %26 = arith.select %24, %13, %25 : vector<8x128xi1>, vector<8x128xf32>
    %cst_13 = arith.constant dense<0.000000e+00> : vector<8xf32>
    %27 = vector.multi_reduction <add>, %26, %cst_13 [1] : vector<8x128xf32> to vector<8xf32>
    %28 = vector.shape_cast %27 : vector<8xf32> to vector<8x1xf32>
    %29 = arith.mulf %26, %26 : vector<8x128xf32>
    %cst_14 = arith.constant dense<0.000000e+00> : vector<8xf32>
    %30 = vector.multi_reduction <add>, %29, %cst_14 [1] : vector<8x128xf32> to vector<8xf32>
    %31 = vector.shape_cast %30 : vector<8xf32> to vector<8x1xf32>
    %32 = tpu.concatenate %28, %31 in 1 : vector<8x1xf32>, vector<8x1xf32> -> vector<8x2xf32>
    %c0_15 = arith.constant 0 : index
    %c0_16 = arith.constant 0 : index
    %c0_17 = arith.constant 0 : index
    %c0_18 = arith.constant 0 : index
    %33 = vector.load %arg6[%c0_15, %c0_16, %c0_17, %c0_18] : memref<1x1x8x2xf32, #tpu.memory_space<vmem>>, vector<1x1x8x2xf32>
    %34 = vector.shape_cast %33 : vector<1x1x8x2xf32> to vector<8x2xf32>
    %35 = vector.shape_cast %32 : vector<8x2xf32> to vector<1x1x8x2xf32>
    tpu.vector_store %arg6[%c0_15, %c0_16, %c0_17, %c0_18], %35 {strides = array<i32>} : memref<1x1x8x2xf32, #tpu.memory_space<vmem>>, vector<1x1x8x2xf32>,
    return
  }
  func.func @transform_0(%arg0: i32, %arg1: i32) -> (i32, i32, i32, i32) {
    %c0_i32 = arith.constant 0 : i32
    %c0_i32_0 = arith.constant 0 : i32
    %c0_i32_1 = arith.constant 0 : i32
    return %arg0, %c0_i32, %c0_i32_0, %arg1 : i32, i32, i32, i32
  }
  func.func @transform_1(%arg0: i32, %arg1: i32) -> (i32, i32, i32, i32) {
    %c1_i32 = arith.constant 1 : i32
    %0 = arith.addi %arg1, %c1_i32 : i32
    %c0_i32 = arith.constant 0 : i32
    %c0_i32_0 = arith.constant 0 : i32
    %c0_i32_1 = arith.constant 0 : i32
    return %arg0, %c0_i32, %c0_i32_0, %0 : i32, i32, i32, i32
  }
  func.func @transform_2(%arg0: i32, %arg1: i32) -> (i32, i32) {
    %c0_i32 = arith.constant 0 : i32
    %c0_i32_0 = arith.constant 0 : i32
    %c0_i32_1 = arith.constant 0 : i32
    return %c0_i32, %c0_i32_0 : i32, i32
  }
  func.func @transform_3(%arg0: i32, %arg1: i32) -> (i32, i32, i32) {
    %c0_i32 = arith.constant 0 : i32
    %c0_i32_0 = arith.constant 0 : i32
    return %arg0, %c0_i32, %arg1 : i32, i32, i32
  }
  func.func @transform_4(%arg0: i32, %arg1: i32) -> (i32, i32, i32, i32) {
    %c0_i32 = arith.constant 0 : i32
    %c0_i32_0 = arith.constant 0 : i32
    %c0_i32_1 = arith.constant 0 : i32
    return %arg0, %arg1, %c0_i32, %c0_i32_0 : i32, i32, i32, i32
  }
}

module attributes {stable_mosaic.version = 11 : i64} {
  func.func @_bn_relu_kernel(%arg0: i32, %arg1: i32, %arg2: memref<1x8x128xf32, #tpu.memory_space<vmem>>, %arg3: memref<8x1xf32, #tpu.memory_space<vmem>>, %arg4: memref<8x1xf32, #tpu.memory_space<vmem>>, %arg5: memref<1x8x128xf32, #tpu.memory_space<vmem>>) attributes {dimension_semantics = [#tpu.dimension_semantics<parallel>, #tpu.dimension_semantics<parallel>], iteration_bounds = array<i64: 2, 1>, scalar_prefetch = 0 : i64, scratch_operands = 0 : i64, tpu.core_type = #tpu.core_type<tc>, window_params = [{transform_indices = @transform_0, window_bounds = array<i64: 1, 8, 128>}, {pipeline_mode = #tpu.pipeline_mode<synchronous>, transform_indices = @transform_1, window_bounds = array<i64: 8, 1>}, {pipeline_mode = #tpu.pipeline_mode<synchronous>, transform_indices = @transform_2, window_bounds = array<i64: 8, 1>}, {transform_indices = @transform_3, window_bounds = array<i64: 1, 8, 128>}]} {
    %c0 = arith.constant 0 : index
    %c0_0 = arith.constant 0 : index
    %c0_1 = arith.constant 0 : index
    %0 = vector.load %arg2[%c0, %c0_0, %c0_1] : memref<1x8x128xf32, #tpu.memory_space<vmem>>, vector<1x8x128xf32>
    %1 = vector.shape_cast %0 : vector<1x8x128xf32> to vector<8x128xf32>
    %c0_2 = arith.constant 0 : index
    %c0_3 = arith.constant 0 : index
    %2 = vector.load %arg3[%c0_2, %c0_3] : memref<8x1xf32, #tpu.memory_space<vmem>>, vector<8x1xf32>
    %3 = vector.broadcast %2 : vector<8x1xf32> to vector<8x128xf32>
    %4 = arith.mulf %1, %3 : vector<8x128xf32>
    %c0_4 = arith.constant 0 : index
    %c0_5 = arith.constant 0 : index
    %5 = vector.load %arg4[%c0_4, %c0_5] : memref<8x1xf32, #tpu.memory_space<vmem>>, vector<8x1xf32>
    %6 = vector.broadcast %5 : vector<8x1xf32> to vector<8x128xf32>
    %7 = arith.addf %4, %6 : vector<8x128xf32>
    %cst = arith.constant 0.000000e+00 : f32
    %8 = vector.broadcast %cst : f32 to vector<8x128xf32>
    %9 = arith.maximumf %7, %8 : vector<8x128xf32>
    %c0_6 = arith.constant 0 : index
    %c0_7 = arith.constant 0 : index
    %c0_8 = arith.constant 0 : index
    %10 = vector.load %arg5[%c0_6, %c0_7, %c0_8] : memref<1x8x128xf32, #tpu.memory_space<vmem>>, vector<1x8x128xf32>
    %11 = vector.shape_cast %10 : vector<1x8x128xf32> to vector<8x128xf32>
    %12 = vector.shape_cast %9 : vector<8x128xf32> to vector<1x8x128xf32>
    tpu.vector_store %arg5[%c0_6, %c0_7, %c0_8], %12 {strides = array<i32>} : memref<1x8x128xf32, #tpu.memory_space<vmem>>, vector<1x8x128xf32>,
    return
  }
  func.func @transform_0(%arg0: i32, %arg1: i32) -> (i32, i32, i32) {
    %c0_i32 = arith.constant 0 : i32
    %c0_i32_0 = arith.constant 0 : i32
    return %arg0, %c0_i32, %arg1 : i32, i32, i32
  }
  func.func @transform_1(%arg0: i32, %arg1: i32) -> (i32, i32) {
    %c0_i32 = arith.constant 0 : i32
    %c0_i32_0 = arith.constant 0 : i32
    %c0_i32_1 = arith.constant 0 : i32
    return %c0_i32, %c0_i32_0 : i32, i32
  }
  func.func @transform_2(%arg0: i32, %arg1: i32) -> (i32, i32) {
    %c0_i32 = arith.constant 0 : i32
    %c0_i32_0 = arith.constant 0 : i32
    %c0_i32_1 = arith.constant 0 : i32
    return %c0_i32, %c0_i32_0 : i32, i32
  }
  func.func @transform_3(%arg0: i32, %arg1: i32) -> (i32, i32, i32) {
    %c0_i32 = arith.constant 0 : i32
    %c0_i32_0 = arith.constant 0 : i32
    return %arg0, %c0_i32, %arg1 : i32, i32, i32
  }
}

</mosaic_0001>

<bundles_post_ra>
// kernel: conv_bn_relu.2
= control target key start
LH: loop header
LB: loop body
LE: loop exit
PB: predicated region body
PF: predicated region fallthrough
CT: control target
= control target key end

     0   :  { %10 = vsyncpa [#allocation3], 0  ;;  %s854_s0 = inlined_call_operand.vmem [shape: f32[2,1,4,256], index: 0, kind: input, shape index: {}, may-alias: {0,1}]   ;;  %s855_s1 = inlined_call_operand.vmem [shape: f32[2,1,4,256], index: 1, kind: input, shape index: {}, may-alias: {0,1}]   ;;  %s856_s2 = inlined_call_operand.vmem [shape: f32[8,12], index: 2, kind: input, shape index: {}]   ;;  %s857_s3 = inlined_call_operand.hbm [shape: f32[2,8,16], index: 3, kind: output, shape index: {0}]   ;;  %s858_s4 = inlined_call_operand.vmem [shape: f32[2,1,8,2], index: 4, kind: output, shape index: {1}]  }
   0x1   :  { %12 = vsyncpa [#allocation3 + $0x1], 0  ;;  %s741_s15 = smov 0   ;;  %s743_s16 = smov 0  }
   0x2   :  { %s745_s17 = smov 0   ;;  %s747_s18 = smov 0  }
   0x3   :  { %s749_s19 = smov 0   ;;  %s751_s20 = smov 0  }
   0x4 LB: > { %s543_s21 = sadd.s32 4294967295, %s709_s20   ;;  %s544_s22 = sadd.s32 4294967294, %s709_s20   ;;  %s709_s20 = sphi %s751_s20, %s18_s20   ;;  %s705_s19 = sphi %s749_s19, %s865_s19   ;;  %s701_s18 = sphi %s747_s18, %s864_s18   ;;  %s697_s17 = sphi %s745_s17, %s863_s17   ;;  %s693_s16 = sphi %s743_s16, %s862_s16   ;;  %s689_s15 = sphi %s741_s15, %s861_s15  }
   0x5   : > { %s30_s23 = sadd.s32 1, %s705_s19  ;;  %s118_s24 = sadd.s32 1, %s697_s17 }
   0x6   : > { %p32_p0 = scmp.ge.s32.totalorder %s30_s23, 2  ;;  %p128_p1 = scmp.ne.s32.totalorder %s697_s17, %s693_s16 }
   0x7   : > { %p129_p2 = scmp.eq.s32.totalorder %s543_s21, 1  ;;  %p134_p3 = scmp.ne.s32.totalorder %s693_s16, %s689_s15 }
   0x8   : > { %s867_s23 = smov (%p32_p0, %s30_s23), 0  ;;  %p135_p5 = scmp.eq.s32.totalorder %s544_s22, 1 }
   0x9   : > { %p781_p4 = por %p129_p2, %p128_p1  ;;  %s113_s26 = ssub.s32 %s705_s19, %s867_s23 }
   0xa   : > { %p547_p6 = scmp.ge.s32.totalorder %s709_s20, 1  ;;  %p116_p7 = scmp.eq.s32.totalorder %s113_s26, 0 }
   0xb   : > { %p788_p8 = por %p135_p5, %p134_p3  ;;  %p208_p9 = scmp.lt.s32.totalorder %s709_s20, 3 }
   0xc   : > { %s794_s28 = scalar_select %p116_p7, %s697_s17, %s118_s24  }
   0xd   : > { %p209_p10 = pnand %p547_p6, %p208_p9 }
   0xe   : > { %p253_p11 = scmp.lt.s32.totalorder (!%p209_p10), %s701_s18, 1  ;;  %s713_s12 = smov (!%p209_p10), 126  }
   0xf   : > { %212 = sbr.rel (%p209_p10) target bundleno = 485 (0x1e5), region = 32  ;;  %s714_s13 = smov (!%p209_p10), 127  }
  0x10   : > { %s241_s22 = sand.u32 (!%p209_p10), 1, %s693_s16  }
  0x11   : > { %s548_s24 = sshll.u32 (!%p209_p10), %s241_s22, 3  ;;  %s396_s9 = scalar_lea.sflag (!%p209_p10), [#allocation3], %s241_s22 }
  0x12   : > { %s243_s26 = scalar_lea.vmem (!%p209_p10), [#allocation2], %s548_s24 }
  0x13   : > { %s417_s5 = sshll.u32 (!%p209_p10), %s243_s26, 4  ;;  %s418_s5 = int_to_ptr.vmem [resolvable:$true] %s417_s5 }
  0x14   : > { %v711_v0 = vmov 0.0   ;;  %s254_s29 = scalar_select %p253_p11, %s701_s18, 1  ;;  %vm712_vm0 = vmmov 0   ;;  %vm295_vm1 = vcmask 1031168   ;;  %vm297_vm2 = vcmask 1043456   ;;  %v299_v11 = vld [vmem:[%s856_s2] sm:$0xff] }
  0x15   : > { %567 = vmatprep.subr.mxu0 %v711_v0  ;;  %571 = vmatprep.mubr.msk.f32.mxu0 %vm712_vm0, %v711_v0  ;;  %vm288_vm3 = vcmask 1039360   ;;  %vm300_vm4 = vcmask 97280   ;;  %v378_v13 = vlaneseq  ;;  %s633_s10 = scalar_lea.vmem %s418_s5, 128 }
  0x16   : > { %s798_s30 = sshll.u32 %s254_s29, 3  ;;  %s557_s29 = sshll.u32 %s701_s18, 7 }
  0x17   : > { %s260_s7 = scalar_lea.vmem %s854_s0, %s798_s30  ;;  %s562_s8 = sadd.s32 4, %s798_s30  ;;  %v379_v14 = vand.u32 127, %v378_v13 }
  0x18   : > { %v278_v1 = vld [vmem:[%s260_s7] sm:$0xf]  ;;  %s269_s11 = scalar_lea.vmem %s855_s1, %s562_s8  ;;  %s415_s8 = scalar_lea.hbm %s857_s3, %s557_s29 }
  0x19   : > { %291 = vrot.lane.b32.xlu0 %v278_v1, %s713_s12  ;;  %v282_v2 = vrot.slane %v278_v1, 4  ;;  %v279_v3 = vld [vmem:[%s269_s11] sm:$0xf]  ;;  %vm382_vm5 = vcmp.lt.s32.totalorder %v379_v14, 16  ;;  %p634_p12 = scmp.ne.s32.totalorder %s418_s5, %s633_s10  ;;  %s715_s11 = smov [#allocation2]  }
  0x1a   : > { %v283_v4 = vrot.slane %v279_v3, 4 }
  0x1b   : > { %284 = vrot.lane.b32.xlu1 %v282_v2, %s714_s13  ;;  %p635_p13 = pnand %p634_p12, %p781_p4 }
  0x1d   : > { %293 = vrot.lane.b32.xlu0 %v279_v3, %s713_s12  ;;  %p636_p0 = pneg %p635_p13  ;;  %s637_s12 = sshll.u32 %s715_s11, 4  ;;  %s638_s12 = int_to_ptr.vmem [resolvable:$false] %s637_s12 }
  0x1e   : > { %p640_p1 = scmp.lt.s32.totalorder %s418_s5, %s638_s12 }
  0x1f   : > { %286 = vrot.lane.b32.xlu1 %v283_v4, %s714_s13  ;;  %s639_s13 = scalar_lea.vmem %s638_s12, 256 }
  0x20   : > { %p641_p2 = scmp.lt.s32.totalorder %s639_s13, %s633_s10 }
  0x22   : > { %p642_p3 = por %p641_p2, %p640_p1 }
  0x24   : > { %p643_p5 = pnand %p642_p3, %p636_p0 }
  0x8b   : > { %v292_v5 = vpop.permute.xlu0 %291 }
  0x8d   : > { %v285_v6 = vpop.permute.xlu1 %284 }
  0x8f   : > { %v294_v7 = vpop.permute.xlu0 %293 }
  0x90   : > { %v296_v8 = vsel %vm295_vm1, %v292_v5, %v294_v7 }
  0x91   : > { %568 = vmatpush3.msk.msra.mxu0 %vm297_vm2, %v296_v8  ;;  %v287_v9 = vpop.permute.xlu1 %286 }
  0x92   : > { %v289_v10 = vsel %vm288_vm3, %v285_v6, %v287_v9  ;;  %569 = vmatprep.subr.mxu0 %v711_v0 }
  0x93   : > { %v298_v12 = vsel %vm297_vm2, %v278_v1, %v289_v10 }
  0x94   : > { %570 = vmatpush3.msra.mxu0 %v298_v12 }
  0x95   : > { %572 = vmatmul.mubr.msk.f32.vlgmr.msra.gmra.mxu0 %vm300_vm4, %v299_v11 }
 0x155   : > { %v372_v15 = vpop.f32.mrf.mxu0 }
 0x156   : > { %376 = vst [vmem:[%s243_s26] sm:$0xff] %v372_v15  ;;  %v385_v16 = vsel %vm382_vm5, %v372_v15, 0.0 }
 0x157   : > { %386 = vadd.xlane.f32.xlu0 %v385_v16  ;;  %v573_v17 = vpop.f32.mrf.mxu0  ;;  %v388_v18 = vmul.f32 %v385_v16, %v385_v16 }
 0x159   : > { %389 = vadd.xlane.f32.xlu1 %v388_v18 }
 0x15a   : > { %646 = shalt.err (!%p643_p5)
}
 0x15b   : > { %s647_s18 = scalar_lea.hbm %s415_s8, 128  ;;  %s651_s22 = scalar_lea.hbm %s857_s3, 256 }
 0x15c   : > { %p648_p6 = scmp.ne.s32.totalorder %s415_s8, %s647_s18  ;;  %p652_p10 = scmp.lt.s32.totalorder %s415_s8, %s857_s3 }
 0x15d   : > { %p653_p11 = scmp.lt.s32.totalorder %s651_s22, %s647_s18 }
 0x15e   : > { %p649_p7 = pnand %p648_p6, %p781_p4 }
 0x15f   : > { %p654_p12 = por %p653_p11, %p652_p10 }
 0x160   : > { %p650_p9 = pneg %p649_p7 }
 0x162   : > { %p655_p13 = pnand %p654_p12, %p650_p9 }
 0x164   : > { %658 = shalt.err (!%p655_p13)
}
 0x165   : > { %574 = dma.vmem_to_hbm [thread:$0]  (%p781_p4), %s418_s5, 128, %s415_s8, %s396_s9   ;;  %vm391_vm6 = vcmask 7168   ;;  %vm393_vm7 = vcmask 15360  }
 0x166   : > { %s277_s7 = scalar_lea.vmem %s858_s4, %s798_s30 }
 0x1e0   : > { %v387_v19 = vpop.xlane.xlu0 %386 }
 0x1e2   : > { %v390_v20 = vpop.xlane.xlu1 %389 }
 0x1e3   : > { %v392_v21 = vsel %vm391_vm6, %v387_v19, %v390_v20 }
 0x1e4   : > { %394 = vst.msk [vmem:[%s277_s7] sm:$0xff] %vm393_vm7, %v392_v21 }
 0x1e5 PF: > { %p580_p0 = scmp.ge.s32.totalorder %s709_s20, 2  ;;  %s432_s10 = sand.u32 1, %s689_s15  }
 0x1e6   : > { %s433_s25 = scalar_lea.sflag [#allocation3], %s432_s10 }
 0x1e7   : > { %p577_p1 = pnand %p580_p0, %p788_p8 }
 0x1e9   : > { %p578_p2 = pneg %p577_p1 }
 0x1eb   : > { %684 = dma.done.wait (%p578_p2), %s433_s25, 128  }
 0x1ec   : > { %686 = vsyncadd (%p578_p2), %s433_s25, 4294967168  ;;  %s18_s20 = sadd.s32 1, %s709_s20   ;;  %s861_s15 = smov %s693_s16 }
 0x1ed   : > { %p15_p4 = scmp.ge.s32.totalorder %s18_s20, 4   ;;  %s862_s16 = smov %s697_s17 }
 0x1ee   : > { %s863_s17 = smov %s794_s28  ;;  %s864_s18 = smov %s705_s19 }
 0x1ef   : > { %s865_s19 = smov %s867_s23  ;;  %17 = sbr.rel (!%p15_p4) target bundleno = 4 (0x4), region = 82 }
 0x1f4   :  { %448 = vsyncpa [#allocation3], 1 }
 0x1f5   :  { %450 = vsyncpa [#allocation3 + $0x1], 1 }

// kernel: conv_bn_relu.3
= control target key start
LH: loop header
LB: loop body
LE: loop exit
PB: predicated region body
PF: predicated region fallthrough
CT: control target
= control target key end

     0   :  { %8 = vsyncpa [#allocation3], 0  ;;  %s665_s0 = inlined_call_operand.hbm [shape: f32[2,8,16], index: 0, kind: input, shape index: {}, may-alias: {0,3}]   ;;  %s666_s1 = inlined_call_operand.vmem [shape: f32[8,1], index: 1, kind: input, shape index: {}]   ;;  %s667_s2 = inlined_call_operand.vmem [shape: f32[8,1], index: 2, kind: input, shape index: {}]   ;;  %s668_s3 = inlined_call_operand.hbm [shape: f32[2,8,16], index: 3, kind: output, shape index: {}, may-alias: {0,3}]  }
   0x1   :  { %10 = vsyncpa [#allocation3 + $0x1], 0 }
   0x2   :  { %11 = vsyncpa [#allocation4], 0 }
   0x3   :  { %13 = vsyncpa [#allocation4 + $0x1], 0  ;;  %s525_s12 = smov 0   ;;  %s527_s13 = smov 0  }
   0x4   :  { %s529_s14 = smov 0   ;;  %s531_s15 = smov 0  }
   0x5   :  { %s533_s16 = smov 0   ;;  %s535_s17 = smov 0  }
   0x6 LB: > { %s315_s18 = sadd.s32 4294967295, %s500_s17   ;;  %s316_s19 = sadd.s32 4294967294, %s500_s17   ;;  %s500_s17 = sphi %s535_s17, %s19_s17   ;;  %s496_s16 = sphi %s533_s16, %s680_s16   ;;  %s492_s15 = sphi %s531_s15, %s679_s15   ;;  %s488_s14 = sphi %s529_s14, %s678_s14   ;;  %s484_s13 = sphi %s527_s13, %s677_s13   ;;  %s480_s12 = sphi %s525_s12, %s676_s12  }
   0x7   : > { %s31_s20 = sadd.s32 1, %s496_s16  ;;  %s40_s21 = sadd.s32 1, %s488_s14 }
   0x8   : > { %p33_p0 = scmp.ge.s32.totalorder %s31_s20, 2  ;;  %p47_p1 = scmp.ne.s32.totalorder %s488_s14, %s484_s13 }
   0x9   : > { %p48_p2 = scmp.eq.s32.totalorder %s500_s17, 0  ;;  %p53_p3 = scmp.ne.s32.totalorder %s484_s13, %s480_s12 }
   0xa   : > { %s682_s20 = smov (%p33_p0, %s31_s20), 0  ;;  %p54_p5 = scmp.eq.s32.totalorder %s315_s18, 0 }
   0xb   : > { %p566_p4 = por %p48_p2, %p47_p1  ;;  %s35_s23 = ssub.s32 %s496_s16, %s682_s20 }
   0xc   : > { %p121_p6 = scmp.eq.s32.totalorder %s315_s18, 1  ;;  %p38_p7 = scmp.eq.s32.totalorder %s35_s23, 0 }
   0xd   : > { %p572_p8 = por %p54_p5, %p53_p3  ;;  %p127_p10 = scmp.eq.s32.totalorder %s316_s19, 1 }
   0xe   : > { %p576_p9 = por %p121_p6, %p47_p1  ;;  %p340_p13 = scmp.lt.s32.totalorder %s500_s17, 2 }
   0xf   : > { %s581_s26 = scalar_select %p38_p7, %s488_s14, %s40_s21  }
  0x10   : > { %p583_p11 = por %p127_p10, %p53_p3  ;;  %s153_s28 = sand.u32 1, %s488_s14  }
  0x11   : > { %s319_s29 = sshll.u32 %s153_s28, 3  ;;  %s320_s30 = sshll.u32 %s496_s16, 7 }
  0x12   : > { %s672_s27 = scalar_select %p583_p11, 1, 0 }
  0x13   : > { %s163_s6 = scalar_lea.hbm %s665_s0, %s320_s30  ;;  %s157_s7 = scalar_lea.vmem [#allocation2], %s319_s29 }
  0x14   : > { %s165_s8 = sshll.u32 %s157_s7, 4  ;;  %p596_p0 = pnand %p340_p13, %p566_p4  ;;  %s166_s8 = int_to_ptr.vmem [resolvable:$true] %s165_s8 }
  0x15   : > { %p321_p1 = scmp.ge.s32.totalorder %s500_s17, 1  ;;  %p170_p2 = scmp.lt.s32.totalorder %s500_s17, 3 }
  0x16   : > { %s154_s10 = scalar_lea.sflag [#allocation3], %s153_s28  ;;  %p394_p3 = pneg %p596_p0 }
  0x17   : > { %s405_s11 = scalar_lea.vmem %s166_s8, 128  ;;  %s502_s18 = smov [#allocation2]  }
  0x18   : > { %p406_p5 = scmp.ne.s32.totalorder %s166_s8, %s405_s11  ;;  %s410_s19 = sshll.u32 %s502_s18, 4  ;;  %s411_s19 = int_to_ptr.vmem [resolvable:$false] %s410_s19 }
  0x19   : > { %s412_s21 = scalar_lea.vmem %s411_s19, 256  ;;  %p413_p10 = scmp.lt.s32.totalorder %s166_s8, %s411_s19 }
  0x1a   : > { %p408_p6 = pnand %p406_p5, %p394_p3  ;;  %p414_p12 = scmp.lt.s32.totalorder %s412_s21, %s405_s11 }
  0x1c   : > { %p409_p7 = pneg %p408_p6  ;;  %p415_p4 = por %p414_p12, %p413_p10 }
  0x1e   : > { %p416_p13 = pnand %p415_p4, %p409_p7 }
  0x20   : > { %419 = shalt.err (!%p416_p13)
}
  0x21   : > { %335 = dma.hbm_to_vmem [thread:$0]  (!%p596_p0), %s163_s6, 128, %s166_s8, %s154_s10  }
  0x22   : > { %p171_p11 = pnand %p321_p1, %p170_p2 }
  0x23   : > { %s611_s22 = sand.u32 (!%p171_p11), 1, %s484_s13  }
  0x24   : > { %174 = sbr.rel (%p171_p11) target bundleno = 189 (0xbd), region = 32  ;;  %s322_s23 = sshll.u32 (!%p171_p11), %s611_s22, 3 }
  0x25   : > { %s177_s28 = scalar_lea.sflag (!%p171_p11), [#allocation3], %s611_s22  ;;  %s180_s29 = scalar_lea.vmem (!%p171_p11), [#allocation2], %s322_s23 }
  0x29   : > { %471 = dma.done.wait (%p572_p8), %s177_s28, 128  }
  0x2a   : > { %473 = vsyncadd (%p572_p8), %s177_s28, 4294967168  ;;  %v503_v0 = vmov 0   ;;  %v204_v1 = vld [vmem:[%s666_s1] sm:$0xff]  ;;  %s325_s24 = sshll.u32 %s492_s15, 7  ;;  %s202_s7 = scalar_lea.vmem [#allocation5], %s322_s23 }
  0x2b   : > { %391 = vset.pattern.permute.xlu0 %v503_v0  ;;  %v211_v2 = vld [vmem:[%s667_s2] sm:$0xff]  ;;  %s235_s8 = sshll.u32 %s202_s7, 4  ;;  %s233_s11 = scalar_lea.hbm %s668_s3, %s325_s24  ;;  %s236_s8 = int_to_ptr.vmem [resolvable:$true] %s235_s8 }
  0x2c   : > { %207 = vperm.xlu0 %391, %v204_v1   ;;  %v203_v4 = vld [vmem:[%s180_s29] sm:$0xff]  ;;  %s221_s18 = scalar_lea.sflag [#allocation4], %s611_s22  ;;  %s420_s19 = scalar_lea.vmem %s236_s8, 128 }
  0x2d   : > { %p421_p8 = scmp.ne.s32.totalorder %s236_s8, %s420_s19  ;;  %s504_s21 = smov [#allocation5]  }
  0x2e   : > { %s424_s28 = sshll.u32 %s504_s21, 4  ;;  %s425_s28 = int_to_ptr.vmem [resolvable:$false] %s424_s28 }
  0x2f   : > { %p422_p11 = pnand %p421_p8, %p576_p9  ;;  %s426_s15 = scalar_lea.vmem %s425_s28, 256 }
  0x30   : > { %214 = vperm.xlu0 %391, %v211_v2   ;;  %p427_p0 = scmp.lt.s32.totalorder %s236_s8, %s425_s28  ;;  %p428_p1 = scmp.lt.s32.totalorder %s426_s15, %s420_s19 }
  0x31   : > { %p423_p12 = pneg %p422_p11 }
  0x32   : > { %p429_p2 = por %p428_p1, %p427_p0 }
  0x34   : > { %p430_p3 = pnand %p429_p2, %p423_p12 }
  0xa7   : > { %v208_v3 = vpop.permute.xlu0 %207 }
  0xa8   : > { %v210_v5 = vmul.f32 %v208_v3, %v203_v4 }
  0xab   : > { %v215_v6 = vpop.permute.xlu0 %214 }
  0xac   : > { %v217_v7 = vadd.f32 %v215_v6, %v210_v5 }
  0xae   : > { %v218_v8 = vmax.f32 %v217_v7, 0.0 }
  0xb0   : > { %219 = vst [vmem:[%s202_s7] sm:$0xff] %v218_v8 }
  0xb1   : > { %433 = shalt.err (!%p430_p3)
}
  0xb2   : > { %s434_s23 = scalar_lea.hbm %s233_s11, 128  ;;  %s438_s30 = scalar_lea.hbm %s668_s3, 256 }
  0xb3   : > { %p435_p5 = scmp.ne.s32.totalorder %s233_s11, %s434_s23  ;;  %p439_p10 = scmp.lt.s32.totalorder %s233_s11, %s668_s3 }
  0xb4   : > { %p440_p4 = scmp.lt.s32.totalorder %s438_s30, %s434_s23 }
  0xb5   : > { %p436_p6 = pnand %p435_p5, %p576_p9 }
  0xb6   : > { %p441_p13 = por %p440_p4, %p439_p10 }
  0xb7   : > { %p437_p7 = pneg %p436_p6 }
  0xb9   : > { %p442_p8 = pnand %p441_p13, %p437_p7 }
  0xbb   : > { %445 = shalt.err (!%p442_p8)
}
  0xbc   : > { %330 = dma.vmem_to_hbm [thread:$0]  (%p576_p9), %s236_s8, 128, %s233_s11, %s221_s18  }
  0xbd PF: > { %s247_s6 = sand.u32 1, %s480_s12   ;;  %p674_p11 = scmp.ne.s32.totalorder %s672_s27, 0 }
  0xbe   : > { %p675_p12 = scmp.ge.s32.totalorder %s500_s17, 2  ;;  %s248_s24 = scalar_lea.sflag [#allocation4], %s247_s6 }
  0xc0   : > { %p337_p0 = pnand %p675_p12, %p674_p11 }
  0xc2   : > { %p338_p1 = pneg %p337_p0 }
  0xc4   : > { %475 = dma.done.wait (%p338_p1), %s248_s24, 128  }
  0xc5   : > { %477 = vsyncadd (%p338_p1), %s248_s24, 4294967168  ;;  %s19_s17 = sadd.s32 1, %s500_s17   ;;  %s676_s12 = smov %s484_s13 }
  0xc6   : > { %p16_p2 = scmp.ge.s32.totalorder %s19_s17, 4   ;;  %s677_s13 = smov %s488_s14 }
  0xc7   : > { %s678_s14 = smov %s581_s26  ;;  %s679_s15 = smov %s496_s16 }
  0xc8   : > { %s680_s16 = smov %s682_s20  ;;  %18 = sbr.rel (!%p16_p2) target bundleno = 6 (0x6), region = 77 }
  0xcd   :  { %253 = vsyncpa [#allocation3], 1 }
  0xce   :  { %255 = vsyncpa [#allocation3 + $0x1], 1 }
  0xcf   :  { %256 = vsyncpa [#allocation4], 1 }
  0xd0   :  { %258 = vsyncpa [#allocation4 + $0x1], 1 }

</bundles_post_ra>
